<compile_context>
chip_gen: v5e
topology: v5e:2x2
jax: 0.10.0
libtpu: 0.0.40
codegen_flags: <defaults>
</compile_context>

<pallas_src>
import functools

import jax
import jax.numpy as jnp
from jax.experimental import pallas as pl
from jax.experimental.pallas import tpu as pltpu


# ----------------------------------------------------------------------------
# Per-chip memory parameters (scoped-VMEM limit + spatial-tile budget)
# ----------------------------------------------------------------------------
def _chip_memory_params():
    vmem_phys = None
    try:
        info = pltpu.get_tpu_info()
        vmem_phys = getattr(info, "vmem_capacity_bytes", None)
        if vmem_phys is None:
            vmem_phys = getattr(info, "vmem_size_bytes", None)
    except Exception:
        vmem_phys = None
    mib = 1024 * 1024
    if vmem_phys is None or vmem_phys <= 0:
        # Unknown chip: conservative settings that are safe even on v7x.
        return 32 * mib, 8 * mib
    if vmem_phys <= 64 * mib:
        # v7x: 64 MiB / TensorCore.  Keep scoped limit at 32 MiB but use a
        # larger tile budget to amortize per-step overhead at 3.2 TB/s HBM.
        return 32 * mib, 10 * mib
    # v5e / v6e: 128 MiB VMEM — raise scoped limit and tile budget.
    return 64 * mib, 12 * mib


_VMEM_LIMIT_BYTES, _TILE_BUDGET_BYTES = _chip_memory_params()


# ----------------------------------------------------------------------------
# Kernels (lane-dense: spatial H*W on lanes, channels on sublanes)
# ----------------------------------------------------------------------------
def _conv1x1_kernel(x_ref, w_ref, b_ref, o_ref, *, apply_relu):
    # x_ref: (1, C_in, TS)    one batch element, lane-dense spatial tile
    # w_ref: (C_out, C_in)    1x1-conv weight (BN already folded in if any)
    # b_ref: (C_out, 1)       f32 bias
    # o_ref: (1, C_out, TS)
    x = x_ref[0]                                                # (C_in, TS)
    y = jnp.dot(w_ref[...], x, preferred_element_type=jnp.float32)
    y = y + b_ref[...]                                          # lane-broadcast
    if apply_relu:
        y = jnp.maximum(y, 0.0)
    o_ref[0] = y.astype(o_ref.dtype)


def _stack_tail_kernel(feat_ref, ident_ref, wl_ref, bl_ref, wr_ref, br_ref,
                       logit_ref, xnext_ref):
    # Fused PoseNet per-stack tail:
    #   logit  = W_logit @ feat + b_logit
    #   remap  = ReLU(W_remap @ logit + b_remap)
    #   x_next = identity + feat + remap
    # feat_ref/ident_ref: (1, C, TS); wl:(J, C); bl:(J, 1); wr:(C, J); br:(C, 1)
    # logit_ref: (1, J, TS); xnext_ref: (1, C, TS)
    feat = feat_ref[0]                                          # (C, TS)
    logit = jnp.dot(wl_ref[...], feat, preferred_element_type=jnp.float32)
    logit = logit + bl_ref[...]                                 # f32 (J, TS)
    logit_ref[0] = logit.astype(logit_ref.dtype)
    remap = jnp.dot(wr_ref[...], logit.astype(wr_ref.dtype),
                    preferred_element_type=jnp.float32)         # (C, TS)
    remap = jnp.maximum(remap + br_ref[...], 0.0)
    xnext = ident_ref[0].astype(jnp.float32) + feat.astype(jnp.float32) + remap
    xnext_ref[0] = xnext.astype(xnext_ref.dtype)


# ----------------------------------------------------------------------------
# Tiling helpers
# ----------------------------------------------------------------------------
def _pad_lanes(rows, hw):
    """Pad the lane (last) axis of a (N, C, HW) view up to a multiple of 128."""
    pad = (-hw) % 128
    if pad:
        rows = jnp.pad(rows, ((0, 0), (0, 0), (0, pad)))
    return rows, hw + pad


def _pick_spatial_tile(hw_p, bytes_per_col, n, min_total_steps=4):
    """Largest 128-multiple divisor of hw_p such that (a) the double-buffered
    in+out working set fits the per-chip budget and (b) the total grid has at
    least `min_total_steps` steps (megacore / pipelining)."""
    budget_cap = (_TILE_BUDGET_BYTES // max(bytes_per_col, 1)) // 128 * 128
    budget_cap = max(budget_cap, 128)
    steps_per_batch = -(-min_total_steps // max(n, 1))          # ceil
    mc_cap = max((hw_p // steps_per_batch) // 128 * 128, 128)
    cap = min(budget_cap, mc_cap, hw_p)
    best = 128                                                  # always divides hw_p
    t = 256
    while t <= cap:
        if hw_p % t == 0:
            best = t
        t += 128
    return best


# ----------------------------------------------------------------------------
# Fused 1x1 conv (+bias, +ReLU) on NCHW — no transposes, lane-dense
# ----------------------------------------------------------------------------
def conv1x1_nchw(x, w, b=None, relu=False, out_dtype=None):
    """out[n,o,h,w] = relu?( sum_c w[o,c]*x[n,c,h,w] + b[o] )

    x: (N, C_in, H, W) f32 or bf16; w: (C_out, C_in); b: (C_out,) or None.
    Returns (N, C_out, H, W) in `out_dtype` (defaults to x.dtype).
    Covers Bottleneck._remap_conv, feature_maps' 1x1 conv (BN folded via
    fold_bn_into_conv1x1), logit_maps and remaps when used standalone.
    """
    n, c_in, h, w_sp = x.shape
    c_out = w.shape[0]
    hw = h * w_sp
    out_dtype = x.dtype if out_dtype is None else out_dtype

    w_eff = w.astype(x.dtype)                    # bf16 stays bf16 (no upcast)
    b_eff = (jnp.zeros((c_out,), jnp.float32) if b is None
             else b.astype(jnp.float32)).reshape(c_out, 1)

    x_rows, hw_p = _pad_lanes(x.reshape(n, c_in, hw), hw)       # free if 128-mult

    isz_in = jnp.dtype(x.dtype).itemsize
    isz_out = jnp.dtype(out_dtype).itemsize
    bytes_per_col = 2 * (c_in * isz_in + c_out * isz_out)       # double-buffered
    ts = _pick_spatial_tile(hw_p, bytes_per_col, n)
    grid = (n, hw_p // ts)

    kernel = functools.partial(_conv1x1_kernel, apply_relu=bool(relu))
    flops = 2 * n * hw_p * c_in * c_out
    bytes_accessed = (isz_in * n * hw_p * c_in + isz_out * n * hw_p * c_out
                      + isz_in * c_in * c_out + 4 * c_out)

    out_rows = pl.pallas_call(
        kernel,
        out_shape=jax.ShapeDtypeStruct((n, c_out, hw_p), out_dtype),
        grid_spec=pltpu.PrefetchScalarGridSpec(
            num_scalar_prefetch=0,
            grid=grid,
            in_specs=[
                pl.BlockSpec((1, c_in, ts), lambda i, j: (i, 0, j)),
                pl.BlockSpec((c_out, c_in), lambda i, j: (0, 0)),
                pl.BlockSpec((c_out, 1), lambda i, j: (0, 0)),
            ],
            out_specs=pl.BlockSpec((1, c_out, ts), lambda i, j: (i, 0, j)),
        ),
        compiler_params=pltpu.CompilerParams(
            dimension_semantics=("parallel", "parallel"),
            vmem_limit_bytes=_VMEM_LIMIT_BYTES,
        ),
        cost_estimate=pl.CostEstimate(
            flops=int(flops), transcendentals=0,
            bytes_accessed=int(bytes_accessed)),
    )(x_rows, w_eff, b_eff)

    if hw_p != hw:
        out_rows = out_rows[:, :, :hw]
    return out_rows.reshape(n, c_out, h, w_sp)


def fold_bn_into_conv1x1(w, b, gamma, beta, mean, var, eps=1e-5):
    """Fold inference BatchNorm (gamma, beta, running mean/var) into a 1x1
    conv's weight/bias so `BN(conv(x))` becomes a single matmul+bias."""
    scale = gamma.astype(jnp.float32) / jnp.sqrt(var.astype(jnp.float32) + eps)
    w_eff = w.astype(jnp.float32) * scale[:, None]
    b0 = jnp.zeros_like(mean, dtype=jnp.float32) if b is None else b.astype(jnp.float32)
    b_eff = beta.astype(jnp.float32) + (b0 - mean.astype(jnp.float32)) * scale
    return w_eff, b_eff


# ----------------------------------------------------------------------------
# Fused PoseNet per-stack tail:  logit_maps[i] + remaps[i] + residual add
# ----------------------------------------------------------------------------
def posenet_stack_tail(features, identity, w_logit, b_logit, w_remap, b_remap,
                       out_dtype=None):
    """One pallas_call, two outputs:
         logit_i = Conv1x1(features_i)                       (logit_maps[i])
         x_next  = identity + features_i + ReLU(Conv1x1(logit_i))   (remaps[i])
       The logit intermediate stays VMEM-resident for the remap matmul and
       features/identity are read from HBM exactly once (no separate XLA
       elementwise pass for the residual)."""
    n, c, h, w_sp = features.shape
    assert identity.shape == features.shape
    n_joints = w_logit.shape[0]
    hw = h * w_sp
    out_dtype = features.dtype if out_dtype is None else out_dtype

    cdt = features.dtype
    wl = w_logit.astype(cdt)
    wr = w_remap.astype(cdt)
    bl = b_logit.astype(jnp.float32).reshape(n_joints, 1)
    br = b_remap.astype(jnp.float32).reshape(c, 1)

    feat_rows, hw_p = _pad_lanes(features.reshape(n, c, hw), hw)
    iden_rows, _ = _pad_lanes(identity.astype(cdt).reshape(n, c, hw), hw)

    isz_in = jnp.dtype(cdt).itemsize
    isz_out = jnp.dtype(out_dtype).itemsize
    bytes_per_col = 2 * (2 * c * isz_in + (c + n_joints) * isz_out)
    ts = _pick_spatial_tile(hw_p, bytes_per_col, n)
    grid = (n, hw_p // ts)

    flops = n * hw_p * (4 * c * n_joints + 3 * c)
    bytes_accessed = (isz_in * 2 * n * hw_p * c
                      + isz_out * n * hw_p * (c + n_joints)
                      + 2 * isz_in * c * n_joints + 4 * (c + n_joints))

    logit_rows, xnext_rows = pl.pallas_call(
        _stack_tail_kernel,
        out_shape=(
            jax.ShapeDtypeStruct((n, n_joints, hw_p), out_dtype),
            jax.ShapeDtypeStruct((n, c, hw_p), out_dtype),
        ),
        grid_spec=pltpu.PrefetchScalarGridSpec(
            num_scalar_prefetch=0,
            grid=grid,
            in_specs=[
                pl.BlockSpec((1, c, ts), lambda i, j: (i, 0, j)),        # feat
                pl.BlockSpec((1, c, ts), lambda i, j: (i, 0, j)),        # ident
                pl.BlockSpec((n_joints, c), lambda i, j: (0, 0)),        # W_logit
                pl.BlockSpec((n_joints, 1), lambda i, j: (0, 0)),        # b_logit
                pl.BlockSpec((c, n_joints), lambda i, j: (0, 0)),        # W_remap
                pl.BlockSpec((c, 1), lambda i, j: (0, 0)),               # b_remap
            ],
            out_specs=[
                pl.BlockSpec((1, n_joints, ts), lambda i, j: (i, 0, j)),
                pl.BlockSpec((1, c, ts), lambda i, j: (i, 0, j)),
            ],
        ),
        compiler_params=pltpu.CompilerParams(
            dimension_semantics=("parallel", "parallel"),
            vmem_limit_bytes=_VMEM_LIMIT_BYTES,
        ),
        cost_estimate=pl.CostEstimate(
            flops=int(flops), transcendentals=0,
            bytes_accessed=int(bytes_accessed)),
    )(feat_rows, iden_rows, wl, bl, wr, br)

    if hw_p != hw:
        logit_rows = logit_rows[:, :, :hw]
        xnext_rows = xnext_rows[:, :, :hw]
    logit = logit_rows.reshape(n, n_joints, h, w_sp)
    x_next = xnext_rows.reshape(n, c, h, w_sp)
    return logit, x_next


# ----------------------------------------------------------------------------
if __name__ == "__main__":
    key = jax.random.PRNGKey(0)
    ks = jax.random.split(key, 16)

    def conv_ref(xx, ww, bb=None, relu=False):
        y = jnp.einsum("nchw,oc->nohw", xx.astype(jnp.float32),
                       ww.astype(jnp.float32))
        if bb is not None:
            y = y + bb.astype(jnp.float32)[None, :, None, None]
        return jnp.maximum(y, 0.0) if relu else y

    ok = True

    # --- case 1: Bottleneck._remap_conv (1x1 conv + bias), in != out --------
    N, C_IN, C_OUT, H, W = 2, 4, 8, 16, 16
    x = jax.random.normal(ks[0], (N, C_IN, H, W), jnp.float32)
    w_rm = 0.3 * jax.random.normal(ks[1], (C_OUT, C_IN), jnp.float32)
    b_rm = 0.3 * jax.random.normal(ks[2], (C_OUT,), jnp.float32)
    y1 = jax.block_until_ready(conv1x1_nchw(x, w_rm, b_rm, relu=False))
    ok &= bool(jnp.allclose(y1, conv_ref(x, w_rm, b_rm), atol=1e-4, rtol=1e-4))

    # --- case 2: feature_maps tail — 1x1 conv + BatchNorm + ReLU (BN folded)
    C = 8
    xf = jax.random.normal(ks[3], (N, C, H, W), jnp.float32)
    w_fm = 0.3 * jax.random.normal(ks[4], (C, C), jnp.float32)
    b_fm = 0.3 * jax.random.normal(ks[5], (C,), jnp.float32)
    gamma = 1.0 + 0.2 * jax.random.normal(ks[6], (C,), jnp.float32)
    beta = 0.2 * jax.random.normal(ks[7], (C,), jnp.float32)
    mean = 0.2 * jax.random.normal(ks[8], (C,), jnp.float32)
    var = 0.5 + jax.random.uniform(ks[9], (C,), jnp.float32)
    w_f, b_f = fold_bn_into_conv1x1(w_fm, b_fm, gamma, beta, mean, var)
    y2 = jax.block_until_ready(conv1x1_nchw(xf, w_f, b_f, relu=True))
    yc = conv_ref(xf, w_fm, b_fm)
    y2_ref = jnp.maximum(
        gamma[None, :, None, None] * (yc - mean[None, :, None, None])
        / jnp.sqrt(var[None, :, None, None] + 1e-5) + beta[None, :, None, None],
        0.0)
    ok &= bool(jnp.allclose(y2, y2_ref, atol=1e-3, rtol=1e-3))

    # --- case 3: fused per-stack tail (logit + remap + residual), f32 -------
    H_DIM, N_JOINTS = 32, 16
    feats = jax.random.normal(ks[10], (N, H_DIM, H, W), jnp.float32)
    ident = jax.random.normal(ks[11], (N, H_DIM, H, W), jnp.float32)
    w_lg = 0.1 * jax.random.normal(ks[12], (N_JOINTS, H_DIM), jnp.float32)
    b_lg = 0.1 * jax.random.normal(ks[13], (N_JOINTS,), jnp.float32)
    w_rp = 0.1 * jax.random.normal(ks[14], (H_DIM, N_JOINTS), jnp.float32)
    b_rp = 0.1 * jax.random.normal(ks[15], (H_DIM,), jnp.float32)

    logit, x_next = posenet_stack_tail(feats, ident, w_lg, b_lg, w_rp, b_rp)
    jax.block_until_ready(x_next)
    logit_ref = conv_ref(feats, w_lg, b_lg)
    remap_ref = conv_ref(logit_ref, w_rp, b_rp, relu=True)
    x_next_ref = ident + feats + remap_ref
    ok &= bool(jnp.allclose(logit, logit_ref, atol=1e-4, rtol=1e-4))
    ok &= bool(jnp.allclose(x_next, x_next_ref, atol=1e-4, rtol=1e-4))

    # --- case 4: same fused tail, bf16 activations + weights ----------------
    logit_bf, x_next_bf = posenet_stack_tail(
        feats.astype(jnp.bfloat16), ident.astype(jnp.bfloat16),
        w_lg.astype(jnp.bfloat16), b_lg, w_rp.astype(jnp.bfloat16), b_rp)
    jax.block_until_ready(x_next_bf)
    ok &= bool(jnp.allclose(logit_bf.astype(jnp.float32), logit_ref,
                            atol=1e-1, rtol=1e-1))
    ok &= bool(jnp.allclose(x_next_bf.astype(jnp.float32), x_next_ref,
                            atol=1e-1, rtol=1e-1))

    # --- case 5: non-128-multiple spatial extent (host pad path) ------------
    Hs, Ws = 10, 10
    xs = jax.random.normal(ks[0], (N, C_IN, Hs, Ws), jnp.float32)
    y5 = jax.block_until_ready(conv1x1_nchw(xs, w_rm, b_rm, relu=True))
    ok &= bool(jnp.allclose(y5, conv_ref(xs, w_rm, b_rm, relu=True),
                            atol=1e-4, rtol=1e-4))

    # --- case 6: PoseNet-sized channels / multi-step spatial grid -----------
    H6, W6, C6, J6 = 32, 32, 128, 16
    k6 = jax.random.split(jax.random.PRNGKey(1), 6)
    feats6 = jax.random.normal(k6[0], (N, C6, H6, W6), jnp.float32)
    ident6 = jax.random.normal(k6[1], (N, C6, H6, W6), jnp.float32)
    w6l = 0.1 * jax.random.normal(k6[2], (J6, C6), jnp.float32)
    b6l = 0.1 * jax.random.normal(k6[3], (J6,), jnp.float32)
    w6r = 0.1 * jax.random.normal(k6[4], (C6, J6), jnp.float32)
    b6r = 0.1 * jax.random.normal(k6[5], (C6,), jnp.float32)
    logit6, x6 = posenet_stack_tail(feats6, ident6, w6l, b6l, w6r, b6r)
    jax.block_until_ready(x6)
    logit6_ref = conv_ref(feats6, w6l, b6l)
    x6_ref = ident6 + feats6 + conv_ref(logit6_ref, w6r, b6r, relu=True)
    ok &= bool(jnp.allclose(logit6, logit6_ref, atol=1e-3, rtol=1e-3))
    ok &= bool(jnp.allclose(x6, x6_ref, atol=1e-3, rtol=1e-3))

    if ok:
        print("KERNEL_OK")
    else:
        raise SystemExit("mismatch vs reference")
</pallas_src>

<mosaic_0001>
module attributes {stable_mosaic.version = 11 : i64} {
  func.func @_conv1x1_kernel(%arg0: i32, %arg1: i32, %arg2: memref<1x4x128xf32, #tpu.memory_space<vmem>>, %arg3: memref<8x4xf32, #tpu.memory_space<vmem>>, %arg4: memref<8x1xf32, #tpu.memory_space<vmem>>, %arg5: memref<1x8x128xf32, #tpu.memory_space<vmem>>) attributes {dimension_semantics = [#tpu.dimension_semantics<parallel>, #tpu.dimension_semantics<parallel>], iteration_bounds = array<i64: 2, 2>, scalar_prefetch = 0 : i64, scratch_operands = 0 : i64, tpu.core_type = #tpu.core_type<tc>, window_params = [{transform_indices = @transform_0, window_bounds = array<i64: 1, 4, 128>}, {pipeline_mode = #tpu.pipeline_mode<synchronous>, transform_indices = @transform_1, window_bounds = array<i64: 8, 4>}, {pipeline_mode = #tpu.pipeline_mode<synchronous>, transform_indices = @transform_2, window_bounds = array<i64: 8, 1>}, {transform_indices = @transform_3, window_bounds = array<i64: 1, 8, 128>}]} {
    %c0 = arith.constant 0 : index
    %c0_0 = arith.constant 0 : index
    %c0_1 = arith.constant 0 : index
    %0 = vector.load %arg2[%c0, %c0_0, %c0_1] : memref<1x4x128xf32, #tpu.memory_space<vmem>>, vector<1x4x128xf32>
    %1 = vector.shape_cast %0 : vector<1x4x128xf32> to vector<4x128xf32>
    %c0_2 = arith.constant 0 : index
    %c0_3 = arith.constant 0 : index
    %2 = vector.load %arg3[%c0_2, %c0_3] : memref<8x4xf32, #tpu.memory_space<vmem>>, vector<8x4xf32>
    %cst = arith.constant dense<0.000000e+00> : vector<8x128xf32>
    %3 = tpu.matmul %2, %1, %cst {dimension_numbers = #tpu.dot_dimension_numbers<[1], [0], [0], [1], [0, 0, 1, 1], [], []>} : vector<8x4xf32>, vector<4x128xf32>, vector<8x128xf32> -> vector<8x128xf32>
    %c0_4 = arith.constant 0 : index
    %c0_5 = arith.constant 0 : index
    %4 = vector.load %arg4[%c0_4, %c0_5] : memref<8x1xf32, #tpu.memory_space<vmem>>, vector<8x1xf32>
    %5 = vector.broadcast %4 : vector<8x1xf32> to vector<8x128xf32>
    %6 = arith.addf %3, %5 : vector<8x128xf32>
    %c0_6 = arith.constant 0 : index
    %c0_7 = arith.constant 0 : index
    %c0_8 = arith.constant 0 : index
    %7 = vector.load %arg5[%c0_6, %c0_7, %c0_8] : memref<1x8x128xf32, #tpu.memory_space<vmem>>, vector<1x8x128xf32>
    %8 = vector.shape_cast %7 : vector<1x8x128xf32> to vector<8x128xf32>
    %9 = vector.shape_cast %6 : vector<8x128xf32> to vector<1x8x128xf32>
    tpu.vector_store %arg5[%c0_6, %c0_7, %c0_8], %9 {strides = array<i32>} : memref<1x8x128xf32, #tpu.memory_space<vmem>>, vector<1x8x128xf32>,
    return
  }
  func.func @transform_0(%arg0: i32, %arg1: i32) -> (i32, i32, i32) {
    %c0_i32 = arith.constant 0 : i32
    %c0_i32_0 = arith.constant 0 : i32
    return %arg0, %c0_i32, %arg1 : i32, i32, i32
  }
  func.func @transform_1(%arg0: i32, %arg1: i32) -> (i32, i32) {
    %c0_i32 = arith.constant 0 : i32
    %c0_i32_0 = arith.constant 0 : i32
    %c0_i32_1 = arith.constant 0 : i32
    return %c0_i32, %c0_i32_0 : i32, i32
  }
  func.func @transform_2(%arg0: i32, %arg1: i32) -> (i32, i32) {
    %c0_i32 = arith.constant 0 : i32
    %c0_i32_0 = arith.constant 0 : i32
    %c0_i32_1 = arith.constant 0 : i32
    return %c0_i32, %c0_i32_0 : i32, i32
  }
  func.func @transform_3(%arg0: i32, %arg1: i32) -> (i32, i32, i32) {
    %c0_i32 = arith.constant 0 : i32
    %c0_i32_0 = arith.constant 0 : i32
    return %arg0, %c0_i32, %arg1 : i32, i32, i32
  }
}

</mosaic_0001>

<bundles_post_ra>
// kernel: tpu_custom_call.1
= control target key start
LH: loop header
LB: loop body
LE: loop exit
PB: predicated region body
PF: predicated region fallthrough
CT: control target
= control target key end

     0   :  { %8 = vsyncpa [#allocation3], 0  ;;  %s660_s0 = inlined_call_operand.vmem [shape: f32[2,4,256], index: 0, kind: input, shape index: {}]   ;;  %s661_s1 = inlined_call_operand.vmem [shape: f32[8,4], index: 1, kind: input, shape index: {}]   ;;  %s662_s2 = inlined_call_operand.vmem [shape: f32[8,1], index: 2, kind: input, shape index: {}]   ;;  %s663_s3 = inlined_call_operand.hbm [shape: f32[2,8,256], index: 3, kind: output, shape index: {}]  }
   0x1   :  { %10 = vsyncpa [#allocation3 + $0x1], 0  ;;  %s532_s12 = smov 0   ;;  %s534_s13 = smov 0  }
   0x2   :  { %s536_s14 = smov 0   ;;  %s538_s15 = smov 0  }
   0x3   :  { %s540_s16 = smov 0   ;;  %s542_s17 = smov 0  }
   0x4   :  { %s544_s18 = smov 0   ;;  %s546_s19 = smov 0  }
   0x5 LB: > { %s327_s20 = sadd.s32 4294967295, %s509_s19   ;;  %s328_s21 = sadd.s32 4294967294, %s509_s19   ;;  %s509_s19 = sphi %s546_s19, %s16_s19   ;;  %s505_s18 = sphi %s544_s18, %s672_s18   ;;  %s501_s17 = sphi %s542_s17, %s671_s17   ;;  %s497_s16 = sphi %s540_s16, %s670_s16   ;;  %s493_s15 = sphi %s538_s15, %s669_s15   ;;  %s489_s14 = sphi %s536_s14, %s668_s14   ;;  %s485_s13 = sphi %s534_s13, %s667_s13   ;;  %s481_s12 = sphi %s532_s12, %s666_s12  }
   0x6   : > { %s25_s22 = sadd.s32 1, %s501_s17  ;;  %s28_s23 = sadd.s32 1, %s505_s18 }
   0x7   : > { %p26_p0 = scmp.ge.s32.totalorder %s25_s22, 2  ;;  %p117_p1 = scmp.ne.s32.totalorder %s489_s14, %s485_s13 }
   0x8   : > { %p118_p2 = scmp.eq.s32.totalorder %s327_s20, 3  ;;  %p123_p5 = scmp.ne.s32.totalorder %s485_s13, %s481_s12 }
   0x9   : > { %s674_s22 = smov (%p26_p0, %s25_s22), 0  ;;  %s676_s23 = smov (!%p26_p0, %s28_s23), %s505_s18 }
   0xa   : > { %s103_s24 = ssub.s32 %s501_s17, %s674_s22  ;;  %p583_p3 = por %p118_p2, %p117_p1 }
   0xb   : > { %p30_p4 = scmp.ge.s32.totalorder %s676_s23, 2  ;;  %p124_p6 = scmp.eq.s32.totalorder %s328_s21, 3 }
   0xc   : > { %p331_p7 = scmp.ge.s32.totalorder %s509_s19, 1  ;;  %p159_p9 = scmp.lt.s32.totalorder %s509_s19, 5 }
   0xd   : > { %s678_s23 = smov (%p30_p4, %s676_s23), 0  ;;  %p592_p8 = por %p124_p6, %p123_p5 }
   0xe   : > { %s102_s27 = ssub.s32 %s505_s18, %s678_s23  ;;  %s107_s28 = sadd.s32 1, %s489_s14 }
   0xf   : > { %s104_s29 = sor.u32 %s103_s24, %s102_s27  ;;  %p160_p10 = pnand %p331_p7, %p159_p9 }
  0x10   : > { %p105_p11 = scmp.eq.s32.totalorder %s104_s29, 0  ;;  %p186_p12 = scmp.lt.s32.totalorder (!%p160_p10), %s497_s16, 1 }
  0x11   : > { %163 = sbr.rel (%p160_p10) target bundleno = 161 (0xa1), region = 32  ;;  %p188_p13 = scmp.lt.s32.totalorder (!%p160_p10), %s493_s15, 1 }
  0x12   : > { %s601_s30 = scalar_select %p105_p11, %s489_s14, %s107_s28  }
  0x13   : > { %s338_s28 = sshll.u32 (!%p160_p10), %s497_s16, 1  ;;  %s183_s29 = sand.u32 (!%p160_p10), 1, %s485_s13  }
  0x14   : > { %s242_s4 = sadd.s32 (!%p160_p10), %s493_s15, %s338_s28  ;;  %s332_s5 = sshll.u32 (!%p160_p10), %s183_s29, 3 }
  0x15   : > { %s435_s28 = scalar_lea.hbm (!%p160_p10), %s663_s3, 32 }
  0x16   : > { %v511_v0 = vmov 0   ;;  %v196_v1 = vld [vmem:[%s662_s2] sm:$0xff]  ;;  %s187_s6 = scalar_select %p186_p12, %s497_s16, 1  ;;  %vm206_vm0 = vcmask 1043456   ;;  %vm202_vm1 = vcmask 31744  }
  0x17   : > { %414 = vset.pattern.permute.xlu0 %v511_v0  ;;  %s189_s7 = scalar_select %p188_p13, %s493_s15, 1  ;;  %v195_v2 = vld [vmem:[%s661_s1] sm:$0xff] }
  0x18   : > { %199 = vperm.xlu0 %414, %v196_v1   ;;  %s333_s8 = sshll.u32 %s187_s6, 1  ;;  %s339_s6 = sshll.u32 %s242_s4, 3 }
  0x19   : > { %s191_s9 = sadd.s32 %s333_s8, %s189_s7 }
  0x1a   : > { %s334_s10 = sshll.u32 %s191_s9, 2  ;;  %s244_s9 = scalar_lea.hbm %s663_s3, %s339_s6 }
  0x1b   : > { %s193_s21 = scalar_lea.vmem %s660_s0, %s334_s10  ;;  %s185_s10 = scalar_lea.vmem [#allocation2], %s332_s5 }
  0x1c   : > { %v194_v3 = vld [vmem:[%s193_s21] sm:$0xf]  ;;  %s246_s11 = sshll.u32 %s185_s10, 4  ;;  %s248_s20 = sshll.u32 %s244_s9, 4  ;;  %s247_s11 = int_to_ptr.vmem [resolvable:$true] %s246_s11  ;;  %s249_s20 = int_to_ptr.hbm [resolvable:$true] %s248_s20 }
  0x1d   : > { %335 = vmatpush.msk.msra.mxu0 %vm206_vm0, %v194_v3  ;;  %s232_s21 = scalar_lea.sflag [#allocation3], %s183_s29  ;;  %s429_s16 = sshra.s32 %s249_s20, 4  ;;  %s430_s16 = int_to_ptr.hbm [resolvable:$true] %s429_s16 }
  0x1e   : > { %336 = vmatmul.msk.f32.vlgmr.msra.gmra.mxu0 %vm202_vm1, %v195_v2  ;;  %s431_s15 = scalar_lea.hbm %s430_s16, 8  ;;  %p436_p4 = scmp.lt.s32.totalorder %s430_s16, %s663_s3 }
  0x1f   : > { %p432_p0 = scmp.ne.s32.totalorder %s430_s16, %s431_s15  ;;  %p437_p5 = scmp.lt.s32.totalorder %s435_s28, %s431_s15 }
  0x21   : > { %p433_p1 = pnand %p432_p0, %p583_p3  ;;  %p438_p6 = por %p437_p5, %p436_p4 }
  0x23   : > { %p434_p2 = pneg %p433_p1 }
  0x25   : > { %p439_p7 = pnand %p438_p6, %p434_p2 }
  0x8a   : > { %v200_v4 = vpop.permute.xlu0 %199 }
  0x9b   : > { %v227_v5 = vpop.f32.mrf.mxu0 }
  0x9c   : > { %v228_v6 = vadd.f32 %v227_v5, %v200_v4 }
  0x9e   : > { %230 = vst [vmem:[%s185_s10] sm:$0xff] %v228_v6 }
  0x9f   : > { %442 = shalt.err (!%p439_p7)
}
  0xa0   : > { %342 = dma.vmem_to_hbm [thread:$0]  (%p583_p3), %s247_s11, 128, %s249_s20, %s232_s21  }
  0xa1 PF: > { %p348_p9 = scmp.ge.s32.totalorder %s509_s19, 2  ;;  %s260_s29 = sand.u32 1, %s481_s12  }
  0xa2   : > { %s261_s6 = scalar_lea.sflag [#allocation3], %s260_s29 }
  0xa3   : > { %p345_p10 = pnand %p348_p9, %p592_p8 }
  0xa5   : > { %p346_p11 = pneg %p345_p10 }
  0xa7   : > { %476 = dma.done.wait (%p346_p11), %s261_s6, 128  }
  0xa8   : > { %478 = vsyncadd (%p346_p11), %s261_s6, 4294967168  ;;  %s16_s19 = sadd.s32 1, %s509_s19   ;;  %s666_s12 = smov %s485_s13 }
  0xa9   : > { %p13_p12 = scmp.ge.s32.totalorder %s16_s19, 6   ;;  %s667_s13 = smov %s489_s14 }
  0xaa   : > { %s668_s14 = smov %s601_s30  ;;  %s669_s15 = smov %s501_s17 }
  0xab   : > { %s670_s16 = smov %s505_s18  ;;  %s671_s17 = smov %s674_s22 }
  0xac   : > { %s672_s18 = smov %s678_s23  ;;  %15 = sbr.rel (!%p13_p12) target bundleno = 5 (0x5), region = 67 }
  0xb1   :  { %267 = vsyncpa [#allocation3], 1 }
  0xb2   :  { %269 = vsyncpa [#allocation3 + $0x1], 1 }

</bundles_post_ra>
